<compile_context>
chip_gen: v7x
topology: tpu7x:2x2x1
jax: 0.10.0
libtpu: 0.0.40
codegen_flags: <defaults>
</compile_context>

<pallas_src>
import functools

import jax
import jax.numpy as jnp
from jax import lax
from jax.experimental import pallas as pl
from jax.experimental.pallas import tpu as pltpu


# ----------------------------------------------------------------------------
# Kernels
# ----------------------------------------------------------------------------
def _compute_logits_f32(x_ref, wt_ref, b_ref):
    """logits(f32) = x @ W^T + b, with W pre-transposed to [H, L] in the wrapper."""
    x = x_ref[...]                       # [bt, H], native dtype (bf16/f32)
    w = wt_ref[...]                      # [H, L]
    if x.dtype != w.dtype:               # trace-time branch
        # Run the MXU in the *narrower* operand dtype (bf16 native rate on v5e;
        # f32 needs multiple passes); accumulation is f32 regardless.
        if jnp.dtype(x.dtype).itemsize <= jnp.dtype(w.dtype).itemsize:
            w = w.astype(x.dtype)
        else:
            x = x.astype(w.dtype)
    logits = jnp.dot(x, w, preferred_element_type=jnp.float32)      # [bt, L] f32
    return logits + b_ref[...].astype(jnp.float32)                  # broadcast [1, L]


def _logits_kernel(x_ref, wt_ref, b_ref, logits_ref):
    logits_ref[...] = _compute_logits_f32(x_ref, wt_ref, b_ref).astype(logits_ref.dtype)


def _logits_ce_kernel(x_ref, wt_ref, b_ref, lbl_ref, logits_ref, nll_ref):
    """Classification: per-example negative log-likelihood (mean taken in wrapper)."""
    logits = _compute_logits_f32(x_ref, wt_ref, b_ref)               # [bt, L] f32
    logits_ref[...] = logits.astype(logits_ref.dtype)

    bt, L = logits.shape
    lbl = lbl_ref[...]                                               # [bt, 1] int32
    col = lax.broadcasted_iota(jnp.int32, (bt, L), 1)
    picked = jnp.sum(jnp.where(col == lbl, logits, 0.0), axis=-1, keepdims=True)
    m = jnp.max(logits, axis=-1, keepdims=True)
    lse = m + jnp.log(jnp.sum(jnp.exp(logits - m), axis=-1, keepdims=True))
    nll_ref[...] = (lse - picked).astype(nll_ref.dtype)              # [bt, 1]


def _logits_mse_kernel(x_ref, wt_ref, b_ref, lbl_ref, logits_ref, sqerr_ref):
    """Regression (num_labels == 1): per-example squared error."""
    logits = _compute_logits_f32(x_ref, wt_ref, b_ref)               # [bt, 1] f32
    logits_ref[...] = logits.astype(logits_ref.dtype)
    diff = logits - lbl_ref[...].astype(jnp.float32)
    sqerr_ref[...] = (diff * diff).astype(sqerr_ref.dtype)           # [bt, 1]


# ----------------------------------------------------------------------------
# Tiling helpers
# ----------------------------------------------------------------------------
def _cdiv(a, b):
    return -(-a // b)


def _round_up(x, m):
    return ((x + m - 1) // m) * m


def _vmem_capacity_bytes():
    try:
        return int(pltpu.get_tpu_info().vmem_capacity_bytes)
    except Exception:
        return 64 * 1024 * 1024   # conservative fallback (v7x-sized VMEM)


def _pick_batch_tile(B, H, itemsize):
    """Batch tile: as large as the generation-aware VMEM budget allows, but never
    so large that a big B ends up as a single grid tile (which would idle v7x's
    second TensorCore)."""
    vmem_phys = _vmem_capacity_bytes()
    # Budget for the double-buffered pooled-x tile; weight/bias/outputs are
    # KB-to-low-MB scale.  ~20 MiB on v7x (64 MiB physical), ~32 MiB on v5e/v6e.
    x_budget = 20 * 1024 * 1024 if vmem_phys <= 64 * 1024 * 1024 else 32 * 1024 * 1024
    bt = x_budget // (2 * H * itemsize)
    bt = max(8, min(2048, (bt // 8) * 8))
    if B > 8:
        # Guarantee >= 2 grid tiles so dimension_semantics=("parallel",) shards
        # the grid across both v7x TensorCores.
        bt = min(bt, _round_up(_cdiv(B, 2), 8))
    return min(bt, _round_up(B, 8))


def _vmem_limit_bytes(bt, H, L, x_itemsize, w_itemsize, n_outputs, has_labels):
    """Derive vmem_limit_bytes from the actual double-buffered footprint."""
    lane = 128
    x_bytes = 2 * bt * H * x_itemsize                    # double-buffered pooled x
    w_bytes = 2 * H * max(L, lane) * w_itemsize          # lane-padded [H, L] tile
    b_bytes = 2 * 8 * lane * 4                           # [1, L] bias tile
    out_bytes = n_outputs * 2 * bt * lane * 4            # lane-padded output buffers
    lbl_bytes = (2 * bt * lane * 4) if has_labels else 0
    need = x_bytes + w_bytes + b_bytes + out_bytes + lbl_bytes
    limit = max(16 * 1024 * 1024, (need * 5) // 4)       # 25% headroom for scratch
    return int(min(limit, _vmem_capacity_bytes()))


# ----------------------------------------------------------------------------
# Wrapper
# ----------------------------------------------------------------------------
@functools.partial(jax.jit, static_argnames=("num_labels", "with_labels"))
def glue_decoder_forward(sequence_output, attention_mask, weight, bias,
                         labels=None, *, num_labels=3, with_labels=True):
    """Pallas implementation of GlueDecoder.forward (eval-mode dropout).

    sequence_output: [B, S, H]
    attention_mask : [B, S]   (unused by the reference forward; signature parity)
    weight         : [L, H]   (torch nn.Linear layout)
    bias           : [L]
    labels         : [B] int (classification) or float (regression), optional
    Returns (logits [B, L], loss scalar-or-None).
    """
    del attention_mask  # unused, as in the reference forward
    B, S, H = sequence_output.shape
    L, Hw = weight.shape
    assert Hw == H and L == num_labels

    out_dtype = sequence_output.dtype
    x_itemsize = jnp.dtype(sequence_output.dtype).itemsize
    w_itemsize = jnp.dtype(weight.dtype).itemsize
    bt = _pick_batch_tile(B, H, x_itemsize)
    grid = (_cdiv(B, bt),)

    # Fused token-1 pooling: view as [B, S*H] (free row-major view) and DMA only
    # token-1's columns.  Gated on per-row descriptor size >= 512 B so tiny hidden
    # sizes fall back to a single contiguous XLA slice instead of a slow gather.
    if H % 128 == 0 and S > 1 and H * x_itemsize >= 512:
        x_in = sequence_output.reshape(B, S * H)
        x_spec = pl.BlockSpec((bt, H), lambda i: (i, 1))   # lane block 1 == token 1
        # TODO(synk): add pipeline_mode=pl.Buffered(3) here if profiling shows
        # exposed strided-DMA latency at large grid counts (budget already allows).
    else:
        x_in = sequence_output[:, 1, :]
        x_spec = pl.BlockSpec((bt, H), lambda i: (i, 0))

    # Pre-transpose the weight once (tiny [L, H] array) so the kernel contracts
    # (1, 0) canonically -- no per-step RHS transpose in the Mosaic lowering; the
    # lane-padded [H, L] VMEM tile is < ~0.5 MiB and is DMA'd once (constant block).
    w_t = weight.T                                          # [H, L]
    b2d = bias.reshape(1, L)
    w_spec = pl.BlockSpec((H, L), lambda i: (0, 0))
    b_spec = pl.BlockSpec((1, L), lambda i: (0, 0))
    # NOTE: outputs are (bt, L)/(bt, 1) -> masked stores; lane-packing them into one
    # (bt, 128) block only pays off when B is in the thousands, so it is deferred.
    logits_spec = pl.BlockSpec((bt, L), lambda i: (i, 0))

    has_labels = with_labels and labels is not None
    n_outputs = 2 if has_labels else 1
    compiler_params = pltpu.CompilerParams(
        dimension_semantics=("parallel",),
        vmem_limit_bytes=_vmem_limit_bytes(bt, H, L, x_itemsize, w_itemsize,
                                           n_outputs, has_labels),
    )

    base_bytes = B * H * x_itemsize + L * H * w_itemsize + B * L * x_itemsize

    if not has_labels:
        cost = pl.CostEstimate(flops=2 * B * H * L, transcendentals=0,
                               bytes_accessed=base_bytes)
        logits = pl.pallas_call(
            _logits_kernel,
            grid=grid,
            out_shape=jax.ShapeDtypeStruct((B, L), out_dtype),
            in_specs=[x_spec, w_spec, b_spec],
            out_specs=logits_spec,
            compiler_params=compiler_params,
            cost_estimate=cost,
        )(x_in, w_t, b2d)
        return logits, None

    if num_labels == 1:
        lbl = labels.astype(jnp.float32).reshape(B, 1)
        kernel = _logits_mse_kernel
        transcendentals = 0
    else:
        lbl = labels.astype(jnp.int32).reshape(B, 1)
        kernel = _logits_ce_kernel
        transcendentals = B * (L + 1)   # exp per class + log per row

    cost = pl.CostEstimate(flops=2 * B * H * L, transcendentals=transcendentals,
                           bytes_accessed=base_bytes + 2 * B * 4)
    lbl_spec = pl.BlockSpec((bt, 1), lambda i: (i, 0))
    ploss_spec = pl.BlockSpec((bt, 1), lambda i: (i, 0))

    logits, per_example = pl.pallas_call(
        kernel,
        grid=grid,
        out_shape=(jax.ShapeDtypeStruct((B, L), out_dtype),
                   jax.ShapeDtypeStruct((B, 1), jnp.float32)),
        in_specs=[x_spec, w_spec, b_spec, lbl_spec],
        out_specs=(logits_spec, ploss_spec),
        compiler_params=compiler_params,
        cost_estimate=cost,
    )(x_in, w_t, b2d, lbl)

    # Per-example losses keep every batch tile independent (parallel-safe across
    # both v7x TensorCores); the final mean over a tiny [B, 1] vector runs in XLA.
    return logits, jnp.mean(per_example)


# ----------------------------------------------------------------------------
# Reference (plain JAX) for sanity checking
# ----------------------------------------------------------------------------
def _reference(sequence_output, weight, bias, labels, num_labels):
    pooled = sequence_output[:, 1, :]
    logits = pooled @ weight.T + bias
    if labels is None:
        return logits, None
    if num_labels == 1:
        loss = jnp.mean((logits.reshape(-1) - labels.astype(jnp.float32).reshape(-1)) ** 2)
    else:
        lse = jax.nn.logsumexp(logits, axis=-1)
        picked = jnp.take_along_axis(logits, labels.astype(jnp.int32)[:, None], axis=-1)[:, 0]
        loss = jnp.mean(lse - picked)
    return logits, loss


# ----------------------------------------------------------------------------
# Main
# ----------------------------------------------------------------------------
if __name__ == "__main__":
    B, S, H = 8, 8, 128
    NUM_LABELS = 3   # e.g. task_label_map["mnli"] = 3

    key = jax.random.PRNGKey(0)
    k_seq, k_w, k_b, k_lbl, k_w1, k_b1, k_lbl1 = jax.random.split(key, 7)

    sequence_output = jax.random.normal(k_seq, (B, S, H), dtype=jnp.float32)
    attention_mask = jnp.ones((B, S), dtype=jnp.int32)
    # nn.Linear(hidden_size, num_labels): weight [L, H], bias [L] (torch layout).
    weight = jax.random.normal(k_w, (NUM_LABELS, H), dtype=jnp.float32) * (1.0 / jnp.sqrt(H))
    bias = jax.random.normal(k_b, (NUM_LABELS,), dtype=jnp.float32) * 0.01
    labels = jax.random.randint(k_lbl, (B,), 0, NUM_LABELS)

    # ---- classification (cross-entropy) path ----
    logits, loss = glue_decoder_forward(
        sequence_output, attention_mask, weight, bias, labels,
        num_labels=NUM_LABELS, with_labels=True)
    logits = jax.block_until_ready(logits)
    loss = jax.block_until_ready(loss)

    ref_logits, ref_loss = _reference(sequence_output, weight, bias, labels, NUM_LABELS)
    assert jnp.allclose(logits, ref_logits, atol=1e-5, rtol=1e-5)
    assert jnp.allclose(loss, ref_loss, atol=1e-5, rtol=1e-5)

    # ---- logits-only path ----
    logits_only, no_loss = glue_decoder_forward(
        sequence_output, attention_mask, weight, bias, None,
        num_labels=NUM_LABELS, with_labels=False)
    jax.block_until_ready(logits_only)
    assert no_loss is None
    assert jnp.allclose(logits_only, ref_logits, atol=1e-5, rtol=1e-5)

    # ---- regression (num_labels == 1, MSE) path ----
    weight1 = jax.random.normal(k_w1, (1, H), dtype=jnp.float32) * (1.0 / jnp.sqrt(H))
    bias1 = jax.random.normal(k_b1, (1,), dtype=jnp.float32) * 0.01
    labels1 = jax.random.normal(k_lbl1, (B,), dtype=jnp.float32)
    logits1, loss1 = glue_decoder_forward(
        sequence_output, attention_mask, weight1, bias1, labels1,
        num_labels=1, with_labels=True)
    logits1 = jax.block_until_ready(logits1)
    loss1 = jax.block_until_ready(loss1)
    ref_logits1, ref_loss1 = _reference(sequence_output, weight1, bias1, labels1, 1)
    assert jnp.allclose(logits1, ref_logits1, atol=1e-5, rtol=1e-5)
    assert jnp.allclose(loss1, ref_loss1, atol=1e-5, rtol=1e-5)

    print("KERNEL_OK")
</pallas_src>

<mosaic_0001>
module attributes {stable_mosaic.version = 11 : i64} {
  func.func @_logits_ce_kernel(%arg0: i32, %arg1: memref<8x128xf32, #tpu.memory_space<vmem>>, %arg2: memref<128x3xf32, #tpu.memory_space<vmem>>, %arg3: memref<1x3xf32, #tpu.memory_space<vmem>>, %arg4: memref<8x1xi32, #tpu.memory_space<vmem>>, %arg5: memref<8x3xf32, #tpu.memory_space<vmem>>, %arg6: memref<8x1xf32, #tpu.memory_space<vmem>>) attributes {dimension_semantics = [#tpu.dimension_semantics<parallel>], iteration_bounds = array<i64: 1>, scalar_prefetch = 0 : i64, scratch_operands = 0 : i64, tpu.core_type = #tpu.core_type<tc>, window_params = [{transform_indices = @transform_0, window_bounds = array<i64: 8, 128>}, {pipeline_mode = #tpu.pipeline_mode<synchronous>, transform_indices = @transform_1, window_bounds = array<i64: 128, 3>}, {pipeline_mode = #tpu.pipeline_mode<synchronous>, transform_indices = @transform_2, window_bounds = array<i64: 1, 3>}, {transform_indices = @transform_3, window_bounds = array<i64: 8, 1>}, {transform_indices = @transform_4, window_bounds = array<i64: 8, 3>}, {transform_indices = @transform_5, window_bounds = array<i64: 8, 1>}]} {
    %c0 = arith.constant 0 : index
    %c0_0 = arith.constant 0 : index
    %0 = vector.load %arg1[%c0, %c0_0] : memref<8x128xf32, #tpu.memory_space<vmem>>, vector<8x128xf32>
    %c0_1 = arith.constant 0 : index
    %c0_2 = arith.constant 0 : index
    %1 = vector.load %arg2[%c0_1, %c0_2] : memref<128x3xf32, #tpu.memory_space<vmem>>, vector<128x3xf32>
    %cst = arith.constant dense<0.000000e+00> : vector<8x3xf32>
    %2 = tpu.matmul %0, %1, %cst {dimension_numbers = #tpu.dot_dimension_numbers<[1], [0], [0], [1], [0, 0, 1, 1], [], []>} : vector<8x128xf32>, vector<128x3xf32>, vector<8x3xf32> -> vector<8x3xf32>
    %c0_3 = arith.constant 0 : index
    %c0_4 = arith.constant 0 : index
    %3 = vector.load %arg3[%c0_3, %c0_4] : memref<1x3xf32, #tpu.memory_space<vmem>>, vector<1x3xf32>
    %4 = vector.broadcast %3 : vector<1x3xf32> to vector<8x3xf32>
    %5 = arith.addf %2, %4 : vector<8x3xf32>
    %c0_5 = arith.constant 0 : index
    %c0_6 = arith.constant 0 : index
    %6 = vector.load %arg5[%c0_5, %c0_6] : memref<8x3xf32, #tpu.memory_space<vmem>>, vector<8x3xf32>
    tpu.vector_store %arg5[%c0_5, %c0_6], %5 {strides = array<i32>} : memref<8x3xf32, #tpu.memory_space<vmem>>, vector<8x3xf32>,
    %c0_7 = arith.constant 0 : index
    %c0_8 = arith.constant 0 : index
    %7 = vector.load %arg4[%c0_7, %c0_8] : memref<8x1xi32, #tpu.memory_space<vmem>>, vector<8x1xi32>
    %8 = tpu.iota {dimensions = array<i32: 1>} : vector<8x3xi32>
    %9 = vector.broadcast %7 : vector<8x1xi32> to vector<8x3xi32>
    %10 = arith.cmpi eq, %8, %9 : vector<8x3xi32>
    %cst_9 = arith.constant 0.000000e+00 : f32
    %11 = vector.broadcast %cst_9 : f32 to vector<8x3xf32>
    %12 = arith.select %10, %5, %11 : vector<8x3xi1>, vector<8x3xf32>
    %cst_10 = arith.constant dense<0.000000e+00> : vector<8xf32>
    %13 = vector.multi_reduction <add>, %12, %cst_10 [1] : vector<8x3xf32> to vector<8xf32>
    %14 = vector.shape_cast %13 : vector<8xf32> to vector<8x1xf32>
    %cst_11 = arith.constant dense<0xFF800000> : vector<8xf32>
    %15 = vector.multi_reduction <maximumf>, %5, %cst_11 [1] : vector<8x3xf32> to vector<8xf32>
    %16 = vector.shape_cast %15 : vector<8xf32> to vector<8x1xf32>
    %17 = vector.broadcast %16 : vector<8x1xf32> to vector<8x3xf32>
    %18 = arith.subf %5, %17 : vector<8x3xf32>
    %19 = math.exp %18 : vector<8x3xf32>
    %cst_12 = arith.constant dense<0.000000e+00> : vector<8xf32>
    %20 = vector.multi_reduction <add>, %19, %cst_12 [1] : vector<8x3xf32> to vector<8xf32>
    %21 = vector.shape_cast %20 : vector<8xf32> to vector<8x1xf32>
    %22 = math.log %21 : vector<8x1xf32>
    %23 = arith.addf %16, %22 : vector<8x1xf32>
    %24 = arith.subf %23, %14 : vector<8x1xf32>
    %c0_13 = arith.constant 0 : index
    %c0_14 = arith.constant 0 : index
    %25 = vector.load %arg6[%c0_13, %c0_14] : memref<8x1xf32, #tpu.memory_space<vmem>>, vector<8x1xf32>
    tpu.vector_store %arg6[%c0_13, %c0_14], %24 {strides = array<i32>} : memref<8x1xf32, #tpu.memory_space<vmem>>, vector<8x1xf32>,
    return
  }
  func.func @transform_0(%arg0: i32) -> (i32, i32) {
    %c1_i32 = arith.constant 1 : i32
    %c0_i32 = arith.constant 0 : i32
    return %arg0, %c1_i32 : i32, i32
  }
  func.func @transform_1(%arg0: i32) -> (i32, i32) {
    %c0_i32 = arith.constant 0 : i32
    %c0_i32_0 = arith.constant 0 : i32
    %c0_i32_1 = arith.constant 0 : i32
    return %c0_i32, %c0_i32_0 : i32, i32
  }
  func.func @transform_2(%arg0: i32) -> (i32, i32) {
    %c0_i32 = arith.constant 0 : i32
    %c0_i32_0 = arith.constant 0 : i32
    %c0_i32_1 = arith.constant 0 : i32
    return %c0_i32, %c0_i32_0 : i32, i32
  }
  func.func @transform_3(%arg0: i32) -> (i32, i32) {
    %c0_i32 = arith.constant 0 : i32
    %c0_i32_0 = arith.constant 0 : i32
    return %arg0, %c0_i32 : i32, i32
  }
  func.func @transform_4(%arg0: i32) -> (i32, i32) {
    %c0_i32 = arith.constant 0 : i32
    %c0_i32_0 = arith.constant 0 : i32
    return %arg0, %c0_i32 : i32, i32
  }
  func.func @transform_5(%arg0: i32) -> (i32, i32) {
    %c0_i32 = arith.constant 0 : i32
    %c0_i32_0 = arith.constant 0 : i32
    return %arg0, %c0_i32 : i32, i32
  }
}

</mosaic_0001>

<bundles_post_ra>
// kernel: glue_decoder_forward.1
= control target key start
LH: loop header
LB: loop body
LE: loop exit
PB: predicated region body
PF: predicated region fallthrough
CT: control target
= control target key end

     0   :  { %v239_v0 = vmov 0.0|0.0   ;;  %vm240_vm0 = vmmov 0   ;;  %v241_v4 = vmov 0.0   ;;  %v242_v27 = vmov 0   ;;  %s340_s1 = inlined_call_operand.vmem [shape: f32[128,3], index: 1, kind: input, shape index: {}]   ;;  %s341_s0 = inlined_call_operand.vmem [shape: f32[8,1024], index: 0, kind: input, shape index: {}]   ;;  %s342_s2 = inlined_call_operand.vmem [shape: f32[1,3], index: 2, kind: input, shape index: {}]   ;;  %s343_s4 = inlined_call_operand.vmem [shape: f32[8,3], index: 4, kind: output, shape index: {0}]   ;;  %s344_s3 = inlined_call_operand.vmem [shape: s32[8,1], index: 3, kind: input, shape index: {}]   ;;  %s345_s5 = inlined_call_operand.vmem [shape: f32[8,1], index: 5, kind: output, shape index: {1}]  }
   0x1   :  { %206 = vmatprep.subr.bf16.mxu0 %v239_v0  ;;  %v23_v1 = vld [vmem:[%s340_s1] sm:$0xff]  ;;  %v24_v2 = vld [vmem:[%s340_s1 + $0x8] sm:$0xff]  ;;  %v25_v3 = vld [vmem:[%s340_s1 + $0x10] sm:$0xff]  ;;  %203 = vmatprep.mubr.msk.f32.mxu0 %vm240_vm0, %v241_v4  ;;  %vm116_vm1 = vcmask 23552   ;;  %v119_v37 = vlaneseq  ;;  %vm142_vm3 = vcmask 7168  }
   0x2   :  { %v207_v5 = vpack.c.bf16 %v24_v2, %v23_v1  ;;  %v26_v6 = vld [vmem:[%s340_s1 + $0x18] sm:$0xff]  ;;  %v27_v8 = vld [vmem:[%s340_s1 + $0x20] sm:$0xff]  ;;  %v28_v9 = vld [vmem:[%s340_s1 + $0x28] sm:$0xff]  ;;  %234 = vset.pattern.permute.xlu0 %v242_v27 }
   0x3   :  { %v210_v7 = vpack.c.bf16 %v26_v6, %v25_v3  ;;  %v213_v10 = vpack.c.bf16 %v28_v9, %v27_v8  ;;  %v29_v11 = vld [vmem:[%s340_s1 + $0x30] sm:$0xff]  ;;  %v30_v12 = vld [vmem:[%s340_s1 + $0x38] sm:$0xff]  ;;  %v31_v14 = vld [vmem:[%s340_s1 + $0x40] sm:$0xff]  ;;  %v120_v38 = vand.u32 127, %v119_v37 }
   0x4   :  { %208 = vmatpush3.bf16.msra.mxu0 %v207_v5  ;;  %v216_v13 = vpack.c.bf16 %v30_v12, %v29_v11  ;;  %v32_v15 = vld [vmem:[%s340_s1 + $0x48] sm:$0xff]  ;;  %v33_v17 = vld [vmem:[%s340_s1 + $0x50] sm:$0xff]  ;;  %v34_v18 = vld [vmem:[%s340_s1 + $0x58] sm:$0xff] }
   0x5   :  { %209 = vmatprep.subr.bf16.mxu0 %v239_v0  ;;  %v219_v16 = vpack.c.bf16 %v32_v15, %v31_v14  ;;  %v222_v19 = vpack.c.bf16 %v34_v18, %v33_v17  ;;  %v35_v20 = vld [vmem:[%s340_s1 + $0x60] sm:$0xff]  ;;  %v36_v21 = vld [vmem:[%s340_s1 + $0x68] sm:$0xff]  ;;  %v37_v23 = vld [vmem:[%s340_s1 + $0x70] sm:$0xff] }
   0x6   :  { %v225_v22 = vpack.c.bf16 %v36_v21, %v35_v20  ;;  %v38_v24 = vld [vmem:[%s340_s1 + $0x78] sm:$0xff]  ;;  %v152_v26 = vld [vmem:[%s341_s0 + $0x8] sm:$0xff]  ;;  %v153_v28 = vld [vmem:[%s342_s2] ss:$0 sm:$0xff] }
   0x7   :  { %v228_v25 = vpack.c.bf16 %v38_v24, %v37_v23  ;;  %v118_v33 = vld [vmem:[%s344_s3] sm:$0xff] }
   0x8   :  { %211 = vmatpush3.bf16.msra.mxu0 %v210_v7 }
   0x9   :  { %212 = vmatprep.subr.bf16.mxu0 %v239_v0 }
   0xc   :  { %214 = vmatpush3.bf16.msra.mxu0 %v213_v10 }
   0xd   :  { %215 = vmatprep.subr.bf16.mxu0 %v239_v0 }
  0x10   :  { %217 = vmatpush3.bf16.msra.mxu0 %v216_v13 }
  0x11   :  { %218 = vmatprep.subr.bf16.mxu0 %v239_v0 }
  0x14   :  { %220 = vmatpush3.bf16.msra.mxu0 %v219_v16 }
  0x15   :  { %221 = vmatprep.subr.bf16.mxu0 %v239_v0 }
  0x18   :  { %223 = vmatpush3.bf16.msra.mxu0 %v222_v19 }
  0x19   :  { %224 = vmatprep.subr.bf16.mxu0 %v239_v0 }
  0x1c   :  { %226 = vmatpush3.bf16.msra.mxu0 %v225_v22 }
  0x1d   :  { %227 = vmatprep.subr.bf16.mxu0 %v239_v0 }
  0x20   :  { %229 = vmatpush3.bf16.msra.mxu0 %v228_v25 }
  0x23   :  { %204 = vmatmul.mubr.f32.vlgmr.msra.gmra.mrb[0].mxu0 %v152_v26 }
  0xf6   :  { %v112_v29 = vpop.f32.mrb[0].mxu0 }
  0xf7   :  { %v113_v30 = vadd.f32 %v153_v28, %v112_v29  ;;  %v205_v31 = vpop.f32.mrb[1].mxu0 }
  0xf9   :  { %v129_v32 = vsel %vm116_vm1, %v113_v30, -inf  ;;  %117 = vst.msk [vmem:[%s343_s4] sm:$0xff] %vm116_vm1, %v113_v30 }
  0xfa   :  { %130 = vmax.xlane.f32.xlu0 %v129_v32 }
 0x110   :  { %122 = vperm.xlu0 %234, %v118_v33  }
 0x187   :  { %v131_v34 = vpop.xlane.xlu0 %130 }
 0x188   :  { %v132_v35 = vsub.f32 %v113_v30, %v131_v34 }
 0x18a   :  { %v133_v36 = vmul.f32 1.442695, %v132_v35 }
 0x18c   :  { %235 = vpow2.f32 %v133_v36 }
 0x18f   :  { %v123_v39 = vpop.permute.xlu0 %122 }
 0x190   :  { %vm124_vm2 = vcmp.eq.s32.totalorder %v120_v38, %v123_v39 }
 0x191   :  { %v125_v42 = vsel %vm124_vm2, %v113_v30, 0.0 }
 0x192   :  { %v126_v43 = vsel %vm116_vm1, %v125_v42, 0.0 }
 0x196   :  { %v236_v40 = vpop.eup %235 }
 0x197   :  { %v135_v41 = vsel %vm116_vm1, %v236_v40, 0.0 }
 0x198   :  { %136 = vadd.xlane.f32.xlu1 %v135_v41 }
 0x19c   :  { %127 = vadd.xlane.f32.xlu1 %v126_v43 }
 0x225   :  { %v137_v44 = vpop.xlane.xlu1 %136 }
 0x226   :  { %237 = vlog2.f32 %v137_v44 }
 0x229   :  { %v128_v48 = vpop.xlane.xlu1 %127 }
 0x230   :  { %v238_v45 = vpop.eup %237 }
 0x231   :  { %v139_v46 = vmul.f32 0.6931472, %v238_v45 }
 0x233   :  { %v140_v47 = vadd.f32 %v139_v46, %v131_v34 }
 0x235   :  { %v141_v49 = vsub.f32 %v140_v47, %v128_v48 }
 0x237   :  { %143 = vst.msk [vmem:[%s345_s5] sm:$0xff] %vm142_vm3, %v141_v49 }

</bundles_post_ra>
